<compile_context>
chip_gen: v5e
topology: v5e:2x2
jax: 0.10.0
libtpu: 0.0.40
codegen_flags: <defaults>
</compile_context>

<pallas_src>
import jax
import jax.numpy as jnp
from jax import lax
from jax.experimental import pallas as pl
from jax.experimental.pallas import tpu as pltpu


TILE_LANES = 128          # native lane width on all TPU generations
MAX_TILE_ROWS = 256       # sublane rows per grid step for large N
_NEG_BIG = -1e30          # padding value for risk scores (exp -> 0)
_PAD_ROW_THRESH = 0.5 * _NEG_BIG   # rows whose max is below this are all-pad


def _cox_breslow_kernel(x_ref, w_ref, out_ref, u_tri, l_tri, m_run, s_run):
    """One grid step processes a (TILE_ROWS, 128) tile of the sorted samples.

    Scratch:
      u_tri  -- (128,128) inclusive upper-tri constant (within-row prefix)
      l_tri  -- (TR,TR)   strictly-lower-tri constant (cross-row exclusive prefix)
      m_run  -- (1,1) running max of all risk scores seen so far
      s_run  -- (1,1) running sum of exp(x - m_run) over samples seen so far
    out_ref  -- (1,1) resident accumulator: sum_j w[j] * logcumsumexp(x)[j]
    """
    step = pl.program_id(0)

    @pl.when(step == 0)
    def _init():
        # Triangular constants built once (2-D iota; no HBM input streams).
        lr = lax.broadcasted_iota(jnp.int32, (TILE_LANES, TILE_LANES), 0)
        lc = lax.broadcasted_iota(jnp.int32, (TILE_LANES, TILE_LANES), 1)
        u_tri[...] = (lr <= lc).astype(jnp.float32)        # inclusive prefix
        tr = l_tri.shape[0]
        rr = lax.broadcasted_iota(jnp.int32, (tr, tr), 0)
        rc = lax.broadcasted_iota(jnp.int32, (tr, tr), 1)
        l_tri[...] = (rc < rr).astype(jnp.float32)          # strictly lower
        m_run[...] = jnp.full_like(m_run, _NEG_BIG)
        s_run[...] = jnp.zeros_like(s_run)
        out_ref[...] = jnp.zeros_like(out_ref)

    x = x_ref[...]                                           # (TR, 128) f32
    w = w_ref[...]                                           # (TR, 128) group weights

    # ---- per-row stabilized pieces of logcumsumexp --------------------------
    m_r = jnp.max(x, axis=1, keepdims=True)                  # (TR, 1) per-row max
    ex = jnp.exp(x - m_r)                                    # (TR, 128); pads -> 0
    row_tot = jnp.sum(ex, axis=1, keepdims=True)             # (TR, 1) XLU reduce
    # within-row inclusive prefix sum (MXU, full f32 precision)
    cs = jnp.dot(ex, u_tri[...],
                 precision=lax.Precision.HIGHEST,
                 preferred_element_type=jnp.float32)         # (TR, 128)

    # ---- combine with the carried running (max, sum) ------------------------
    m_prev = m_run[...]                                      # (1, 1)
    m_new = jnp.maximum(m_prev, jnp.max(m_r))                # (1, 1) reuse row maxima
    s_prev = s_run[...] * jnp.exp(m_prev - m_new)            # (1, 1)

    # scale_r underflows to 0 for all-pad rows (m_r == _NEG_BIG); the explicit
    # guard keeps that exact even if _NEG_BIG is ever made less extreme.
    scale_r = jnp.where(m_r > _PAD_ROW_THRESH,
                        jnp.exp(m_r - m_new), 0.0)           # (TR, 1)
    u_rows = scale_r * row_tot                               # (TR, 1) scaled row totals
    # exclusive cross-row prefix inside the tile: skinny (TR,TR)x(TR,1) matmul
    prev_col = jnp.dot(l_tri[...], u_rows,
                       precision=lax.Precision.HIGHEST,
                       preferred_element_type=jnp.float32)   # (TR, 1)

    denom = s_prev + prev_col + scale_r * cs                 # (TR, 128)
    log_cum = m_new + jnp.log(denom)                         # (TR, 128) logcumsumexp

    # ---- partial reduction: sum_j w[j] * log_cum[j] --------------------------
    # select BEFORE the multiply so a -inf/NaN in masked lanes can never leak.
    out_ref[...] += jnp.sum(jnp.where(w > 0.0, log_cum, 0.0) * w)

    # ---- carry forward -------------------------------------------------------
    s_run[...] = s_prev + jnp.sum(u_rows)
    m_run[...] = m_new


def cox_square_loss_breslow(inputs, target, *, max_tile_rows=MAX_TILE_ROWS):
    """Equivalent of CoxSquareLoss(reduction='mean', approximation='Breslow').forward."""
    x = jnp.squeeze(inputs).astype(jnp.float32)              # (N,)
    times = target[:, 0].astype(jnp.float32)
    events = target[:, 1].astype(jnp.float32)
    n = x.shape[0]

    # sum(x*e) is permutation-invariant -> compute it here; the kernel never
    # needs the event stream at all.
    t1 = jnp.sum(x * events)

    # ---- setup / glue (mirrors the module's one-time _initialize) ----------
    sort_idx = jnp.argsort(-times)
    x_s = x[sort_idx]
    t_s = times[sort_idx]
    e_s = events[sort_idx]

    # last index of each consecutive tie group
    is_last = jnp.concatenate([t_s[:-1] != t_s[1:], jnp.ones((1,), dtype=bool)])
    cs_e = jnp.cumsum(e_s)
    b_vals = jnp.where(is_last, cs_e, 0.0)
    prev_boundary = jnp.concatenate(
        [jnp.zeros((1,), jnp.float32), lax.cummax(b_vals, axis=0)[:-1]])
    w = jnp.where(is_last, cs_e - prev_boundary, 0.0)         # d_i at group ends

    # ---- adaptive tile size & lane/sublane-dense padding ---------------------
    rows_needed = -(-n // TILE_LANES)                         # cdiv(n, 128)
    tile_rows = min(max_tile_rows, max(8, -(-rows_needed // 8) * 8))
    tile = tile_rows * TILE_LANES
    n_pad = -(-n // tile) * tile
    pad = n_pad - n
    x_p = jnp.pad(x_s, (0, pad), constant_values=_NEG_BIG).reshape(-1, TILE_LANES)
    w_p = jnp.pad(w, (0, pad)).reshape(-1, TILE_LANES)
    num_tiles = x_p.shape[0] // tile_rows

    grid_spec = pltpu.PrefetchScalarGridSpec(
        num_scalar_prefetch=0,
        grid=(num_tiles,),
        in_specs=[
            pl.BlockSpec((tile_rows, TILE_LANES), lambda i: (i, 0)),   # x
            pl.BlockSpec((tile_rows, TILE_LANES), lambda i: (i, 0)),   # w
        ],
        out_specs=pl.BlockSpec((1, 1), lambda i: (0, 0)),
        scratch_shapes=[
            pltpu.VMEM((TILE_LANES, TILE_LANES), jnp.float32),   # upper-tri const
            pltpu.VMEM((tile_rows, tile_rows), jnp.float32),     # strictly-lower-tri
            pltpu.VMEM((1, 1), jnp.float32),                     # m_run
            pltpu.VMEM((1, 1), jnp.float32),                     # s_run
        ],
    )

    t2 = pl.pallas_call(
        _cox_breslow_kernel,
        out_shape=jax.ShapeDtypeStruct((1, 1), jnp.float32),
        grid_spec=grid_spec,
        compiler_params=pltpu.CompilerParams(
            dimension_semantics=("arbitrary",)),
    )(x_p, w_p)[0, 0]

    loss = (t2 - t1) / n                  # reduction='mean'
    loss = jnp.maximum(loss, 0.0)         # guard FP -eps before sqrt
    return jnp.sqrt(loss)


def _reference(inputs, target):
    """Pure-JAX reference (independent logcumsumexp path via associative_scan)."""
    x = jnp.squeeze(inputs).astype(jnp.float32)
    times = target[:, 0].astype(jnp.float32)
    events = target[:, 1].astype(jnp.float32)
    n = x.shape[0]
    idx = jnp.argsort(-times)
    x_s, t_s, e_s = x[idx], times[idx], events[idx]
    log_cum = lax.associative_scan(jnp.logaddexp, x_s)
    is_last = jnp.concatenate([t_s[:-1] != t_s[1:], jnp.ones((1,), dtype=bool)])
    cs_e = jnp.cumsum(e_s)
    b_vals = jnp.where(is_last, cs_e, 0.0)
    prev_boundary = jnp.concatenate(
        [jnp.zeros((1,), jnp.float32), lax.cummax(b_vals, axis=0)[:-1]])
    w = jnp.where(is_last, cs_e - prev_boundary, 0.0)
    loss = (-jnp.sum(x_s * e_s) + jnp.sum(log_cum * w)) / n
    return jnp.sqrt(loss)


if __name__ == "__main__":
    key = jax.random.PRNGKey(0)
    k1, k2, k3 = jax.random.split(key, 3)

    # --- small case: single tile, small tie groups ---------------------------
    N = 8
    inputs = jax.random.normal(k1, (N, 1), dtype=jnp.float32)   # risk-score column
    times = jax.random.randint(k2, (N,), 0, 4).astype(jnp.float32)   # ties -> Breslow
    events = jax.random.bernoulli(k3, 0.7, (N,)).astype(jnp.float32)
    events = events.at[0].set(1.0)                              # >=1 uncensored
    target = jnp.stack([times, events], axis=1)

    loss = cox_square_loss_breslow(inputs, target)
    jax.block_until_ready(loss)
    ref = _reference(inputs, target)
    assert jnp.allclose(loss, ref, rtol=1e-4, atol=1e-5), (loss, ref)
    assert jnp.isfinite(loss)

    # --- multi-tile case: exercises the carried (max, sum) across grid steps --
    k4, k5, k6 = jax.random.split(jax.random.PRNGKey(1), 3)
    N2 = 2000
    inputs2 = jax.random.normal(k4, (N2, 1), dtype=jnp.float32)
    times2 = jax.random.randint(k5, (N2,), 0, 50).astype(jnp.float32)
    events2 = jax.random.bernoulli(k6, 0.6, (N2,)).astype(jnp.float32)
    events2 = events2.at[0].set(1.0)
    target2 = jnp.stack([times2, events2], axis=1)

    # force a small tile so the grid has 2 steps (carry path covered)
    loss2 = cox_square_loss_breslow(inputs2, target2, max_tile_rows=8)
    jax.block_until_ready(loss2)
    ref2 = _reference(inputs2, target2)
    assert jnp.allclose(loss2, ref2, rtol=1e-4, atol=1e-5), (loss2, ref2)
    assert jnp.isfinite(loss2)

    print("KERNEL_OK")
</pallas_src>

<mosaic_0001>
module attributes {stable_mosaic.version = 11 : i64} {
  func.func @_cox_breslow_kernel(%arg0: i32, %arg1: memref<8x128xf32, #tpu.memory_space<vmem>>, %arg2: memref<8x128xf32, #tpu.memory_space<vmem>>, %arg3: memref<1x1xf32, #tpu.memory_space<vmem>>, %arg4: memref<128x128xf32, #tpu.memory_space<vmem>>, %arg5: memref<8x8xf32, #tpu.memory_space<vmem>>, %arg6: memref<1x1xf32, #tpu.memory_space<vmem>>, %arg7: memref<1x1xf32, #tpu.memory_space<vmem>>) attributes {dimension_semantics = [#tpu.dimension_semantics<arbitrary>], iteration_bounds = array<i64: 1>, scalar_prefetch = 0 : i64, scratch_operands = 4 : i64, tpu.core_type = #tpu.core_type<tc>, window_params = [{transform_indices = @transform_0, window_bounds = array<i64: 8, 128>}, {transform_indices = @transform_1, window_bounds = array<i64: 8, 128>}, {pipeline_mode = #tpu.pipeline_mode<synchronous>, transform_indices = @transform_2, window_bounds = array<i64: 1, 1>}]} {
    %c0_i32 = arith.constant 0 : i32
    %0 = arith.cmpi eq, %arg0, %c0_i32 : i32
    %1 = arith.extui %0 : i1 to i32
    %c0_i32_0 = arith.constant 0 : i32
    %2 = arith.cmpi ne, %1, %c0_i32_0 : i32
    scf.if %2 {
      %65 = tpu.iota {dimensions = array<i32: 0>} : vector<128x128xi32>
      %66 = tpu.iota {dimensions = array<i32: 1>} : vector<128x128xi32>
      %67 = arith.cmpi sle, %65, %66 : vector<128x128xi32>
      %68 = arith.extui %67 : vector<128x128xi1> to vector<128x128xi32>
      %69 = arith.sitofp %68 : vector<128x128xi32> to vector<128x128xf32>
      %c0_30 = arith.constant 0 : index
      %c0_31 = arith.constant 0 : index
      %70 = vector.load %arg4[%c0_30, %c0_31] : memref<128x128xf32, #tpu.memory_space<vmem>>, vector<128x128xf32>
      tpu.vector_store %arg4[%c0_30, %c0_31], %69 {strides = array<i32>} : memref<128x128xf32, #tpu.memory_space<vmem>>, vector<128x128xf32>,
      %71 = tpu.iota {dimensions = array<i32: 0>} : vector<8x8xi32>
      %72 = tpu.iota {dimensions = array<i32: 1>} : vector<8x8xi32>
      %73 = arith.cmpi slt, %72, %71 : vector<8x8xi32>
      %74 = arith.extui %73 : vector<8x8xi1> to vector<8x8xi32>
      %75 = arith.sitofp %74 : vector<8x8xi32> to vector<8x8xf32>
      %c0_32 = arith.constant 0 : index
      %c0_33 = arith.constant 0 : index
      %76 = vector.load %arg5[%c0_32, %c0_33] : memref<8x8xf32, #tpu.memory_space<vmem>>, vector<8x8xf32>
      tpu.vector_store %arg5[%c0_32, %c0_33], %75 {strides = array<i32>} : memref<8x8xf32, #tpu.memory_space<vmem>>, vector<8x8xf32>,
      %cst_34 = arith.constant -1.000000e+30 : f32
      %77 = vector.broadcast %cst_34 : f32 to vector<1x1xf32>
      %c0_35 = arith.constant 0 : index
      %c0_36 = arith.constant 0 : index
      %78 = vector.load %arg6[%c0_35, %c0_36] : memref<1x1xf32, #tpu.memory_space<vmem>>, vector<1x1xf32>
      tpu.vector_store %arg6[%c0_35, %c0_36], %77 {strides = array<i32>} : memref<1x1xf32, #tpu.memory_space<vmem>>, vector<1x1xf32>,
      %cst_37 = arith.constant 0.000000e+00 : f32
      %79 = vector.broadcast %cst_37 : f32 to vector<1x1xf32>
      %c0_38 = arith.constant 0 : index
      %c0_39 = arith.constant 0 : index
      %80 = vector.load %arg7[%c0_38, %c0_39] : memref<1x1xf32, #tpu.memory_space<vmem>>, vector<1x1xf32>
      tpu.vector_store %arg7[%c0_38, %c0_39], %79 {strides = array<i32>} : memref<1x1xf32, #tpu.memory_space<vmem>>, vector<1x1xf32>,
      %cst_40 = arith.constant 0.000000e+00 : f32
      %81 = vector.broadcast %cst_40 : f32 to vector<1x1xf32>
      %c0_41 = arith.constant 0 : index
      %c0_42 = arith.constant 0 : index
      %82 = vector.load %arg3[%c0_41, %c0_42] : memref<1x1xf32, #tpu.memory_space<vmem>>, vector<1x1xf32>
      tpu.vector_store %arg3[%c0_41, %c0_42], %81 {strides = array<i32>} : memref<1x1xf32, #tpu.memory_space<vmem>>, vector<1x1xf32>,
    } else {
    }
    %c0 = arith.constant 0 : index
    %c0_1 = arith.constant 0 : index
    %3 = vector.load %arg1[%c0, %c0_1] : memref<8x128xf32, #tpu.memory_space<vmem>>, vector<8x128xf32>
    %c0_2 = arith.constant 0 : index
    %c0_3 = arith.constant 0 : index
    %4 = vector.load %arg2[%c0_2, %c0_3] : memref<8x128xf32, #tpu.memory_space<vmem>>, vector<8x128xf32>
    %cst = arith.constant dense<0xFF800000> : vector<8xf32>
    %5 = vector.multi_reduction <maximumf>, %3, %cst [1] : vector<8x128xf32> to vector<8xf32>
    %6 = vector.shape_cast %5 : vector<8xf32> to vector<8x1xf32>
    %7 = vector.broadcast %6 : vector<8x1xf32> to vector<8x128xf32>
    %8 = arith.subf %3, %7 : vector<8x128xf32>
    %9 = math.exp %8 : vector<8x128xf32>
    %cst_4 = arith.constant dense<0.000000e+00> : vector<8xf32>
    %10 = vector.multi_reduction <add>, %9, %cst_4 [1] : vector<8x128xf32> to vector<8xf32>
    %11 = vector.shape_cast %10 : vector<8xf32> to vector<8x1xf32>
    %c0_5 = arith.constant 0 : index
    %c0_6 = arith.constant 0 : index
    %12 = vector.load %arg4[%c0_5, %c0_6] : memref<128x128xf32, #tpu.memory_space<vmem>>, vector<128x128xf32>
    %cst_7 = arith.constant dense<0.000000e+00> : vector<8x128xf32>
    %13 = tpu.matmul %9, %12, %cst_7 {dimension_numbers = #tpu.dot_dimension_numbers<[1], [0], [0], [1], [0, 0, 1, 1], [], []>, precision = #tpu.contract_precision<fp32>} : vector<8x128xf32>, vector<128x128xf32>, vector<8x128xf32> -> vector<8x128xf32>
    %c0_8 = arith.constant 0 : index
    %c0_9 = arith.constant 0 : index
    %14 = vector.load %arg6[%c0_8, %c0_9] : memref<1x1xf32, #tpu.memory_space<vmem>>, vector<1x1xf32>
    %15 = vector.shape_cast %6 : vector<8x1xf32> to vector<1x8x1xf32>
    %cst_10 = arith.constant dense<0xFF800000> : vector<1xf32>
    %16 = vector.multi_reduction <maximumf>, %15, %cst_10 [1, 2] : vector<1x8x1xf32> to vector<1xf32>
    %17 = vector.shape_cast %16 : vector<1xf32> to vector<1x1x1xf32>
    %18 = vector.extract %17[0, 0, 0] : f32 from vector<1x1x1xf32>
    %19 = vector.broadcast %18 : f32 to vector<1x1xf32>
    %20 = arith.maximumf %14, %19 : vector<1x1xf32>
    %c0_11 = arith.constant 0 : index
    %c0_12 = arith.constant 0 : index
    %21 = vector.load %arg7[%c0_11, %c0_12] : memref<1x1xf32, #tpu.memory_space<vmem>>, vector<1x1xf32>
    %22 = arith.subf %14, %20 : vector<1x1xf32>
    %23 = math.exp %22 : vector<1x1xf32>
    %24 = arith.mulf %21, %23 : vector<1x1xf32>
    %cst_13 = arith.constant -5.000000e+29 : f32
    %25 = vector.broadcast %cst_13 : f32 to vector<8x1xf32>
    %26 = arith.cmpf ogt, %6, %25 : vector<8x1xf32>
    %27 = vector.broadcast %20 : vector<1x1xf32> to vector<8x1xf32>
    %28 = arith.subf %6, %27 : vector<8x1xf32>
    %29 = math.exp %28 : vector<8x1xf32>
    %cst_14 = arith.constant 0.000000e+00 : f32
    %30 = vector.broadcast %cst_14 : f32 to vector<8x1xf32>
    %31 = arith.select %26, %29, %30 : vector<8x1xi1>, vector<8x1xf32>
    %32 = arith.mulf %31, %11 : vector<8x1xf32>
    %c0_15 = arith.constant 0 : index
    %c0_16 = arith.constant 0 : index
    %33 = vector.load %arg5[%c0_15, %c0_16] : memref<8x8xf32, #tpu.memory_space<vmem>>, vector<8x8xf32>
    %cst_17 = arith.constant dense<0.000000e+00> : vector<8x1xf32>
    %34 = tpu.matmul %33, %32, %cst_17 {dimension_numbers = #tpu.dot_dimension_numbers<[1], [0], [0], [1], [0, 0, 1, 1], [], []>, precision = #tpu.contract_precision<fp32>} : vector<8x8xf32>, vector<8x1xf32>, vector<8x1xf32> -> vector<8x1xf32>
    %35 = vector.broadcast %24 : vector<1x1xf32> to vector<8x1xf32>
    %36 = arith.addf %35, %34 : vector<8x1xf32>
    %37 = vector.broadcast %31 : vector<8x1xf32> to vector<8x128xf32>
    %38 = arith.mulf %37, %13 : vector<8x128xf32>
    %39 = vector.broadcast %36 : vector<8x1xf32> to vector<8x128xf32>
    %40 = arith.addf %39, %38 : vector<8x128xf32>
    %41 = math.log %40 : vector<8x128xf32>
    %42 = vector.broadcast %20 : vector<1x1xf32> to vector<8x128xf32>
    %43 = arith.addf %42, %41 : vector<8x128xf32>
    %c0_18 = arith.constant 0 : index
    %c0_19 = arith.constant 0 : index
    %44 = vector.load %arg3[%c0_18, %c0_19] : memref<1x1xf32, #tpu.memory_space<vmem>>, vector<1x1xf32>
    %cst_20 = arith.constant 0.000000e+00 : f32
    %45 = vector.broadcast %cst_20 : f32 to vector<8x128xf32>
    %46 = arith.cmpf ogt, %4, %45 : vector<8x128xf32>
    %cst_21 = arith.constant 0.000000e+00 : f32
    %47 = vector.broadcast %cst_21 : f32 to vector<8x128xf32>
    %48 = arith.select %46, %43, %47 : vector<8x128xi1>, vector<8x128xf32>
    %49 = arith.mulf %48, %4 : vector<8x128xf32>
    %50 = vector.shape_cast %49 : vector<8x128xf32> to vector<1x8x128xf32>
    %cst_22 = arith.constant dense<0.000000e+00> : vector<1xf32>
    %51 = vector.multi_reduction <add>, %50, %cst_22 [1, 2] : vector<1x8x128xf32> to vector<1xf32>
    %52 = vector.shape_cast %51 : vector<1xf32> to vector<1x1x1xf32>
    %53 = vector.extract %52[0, 0, 0] : f32 from vector<1x1x1xf32>
    %54 = vector.broadcast %53 : f32 to vector<1x1xf32>
    %55 = arith.addf %44, %54 : vector<1x1xf32>
    %c0_23 = arith.constant 0 : index
    %c0_24 = arith.constant 0 : index
    %56 = vector.load %arg3[%c0_23, %c0_24] : memref<1x1xf32, #tpu.memory_space<vmem>>, vector<1x1xf32>
    tpu.vector_store %arg3[%c0_23, %c0_24], %55 {strides = array<i32>} : memref<1x1xf32, #tpu.memory_space<vmem>>, vector<1x1xf32>,
    %57 = vector.shape_cast %32 : vector<8x1xf32> to vector<1x8x1xf32>
    %cst_25 = arith.constant dense<0.000000e+00> : vector<1xf32>
    %58 = vector.multi_reduction <add>, %57, %cst_25 [1, 2] : vector<1x8x1xf32> to vector<1xf32>
    %59 = vector.shape_cast %58 : vector<1xf32> to vector<1x1x1xf32>
    %60 = vector.extract %59[0, 0, 0] : f32 from vector<1x1x1xf32>
    %61 = vector.broadcast %60 : f32 to vector<1x1xf32>
    %62 = arith.addf %24, %61 : vector<1x1xf32>
    %c0_26 = arith.constant 0 : index
    %c0_27 = arith.constant 0 : index
    %63 = vector.load %arg7[%c0_26, %c0_27] : memref<1x1xf32, #tpu.memory_space<vmem>>, vector<1x1xf32>
    tpu.vector_store %arg7[%c0_26, %c0_27], %62 {strides = array<i32>} : memref<1x1xf32, #tpu.memory_space<vmem>>, vector<1x1xf32>,
    %c0_28 = arith.constant 0 : index
    %c0_29 = arith.constant 0 : index
    %64 = vector.load %arg6[%c0_28, %c0_29] : memref<1x1xf32, #tpu.memory_space<vmem>>, vector<1x1xf32>
    tpu.vector_store %arg6[%c0_28, %c0_29], %20 {strides = array<i32>} : memref<1x1xf32, #tpu.memory_space<vmem>>, vector<1x1xf32>,
    return
  }
  func.func @transform_0(%arg0: i32) -> (i32, i32) {
    %c0_i32 = arith.constant 0 : i32
    %c0_i32_0 = arith.constant 0 : i32
    return %arg0, %c0_i32 : i32, i32
  }
  func.func @transform_1(%arg0: i32) -> (i32, i32) {
    %c0_i32 = arith.constant 0 : i32
    %c0_i32_0 = arith.constant 0 : i32
    return %arg0, %c0_i32 : i32, i32
  }
  func.func @transform_2(%arg0: i32) -> (i32, i32) {
    %c0_i32 = arith.constant 0 : i32
    %c0_i32_0 = arith.constant 0 : i32
    %c0_i32_1 = arith.constant 0 : i32
    return %c0_i32, %c0_i32_0 : i32, i32
  }
}

</mosaic_0001>

<bundles_post_ra>
// kernel: tpu_custom_call.1
= control target key start
LH: loop header
LB: loop body
LE: loop exit
PB: predicated region body
PF: predicated region fallthrough
CT: control target
= control target key end

     0   :  { %7 = vsyncpa [#allocation7], 0  ;;  %s1436_s0 = inlined_call_operand.hbm [shape: f32[8,128], index: 0, kind: input, shape index: {}]   ;;  %s1437_s1 = inlined_call_operand.hbm [shape: f32[8,128], index: 1, kind: input, shape index: {}]   ;;  %s1438_s2 = inlined_call_operand.hbm [shape: f32[1,1], index: 2, kind: output, shape index: {}]  }
   0x1   :  { %8 = vsyncpa [#allocation10], 0 }
   0x2   :  { %9 = vsyncpa [#allocation8], 0  ;;  %s15_s11 = sshll.u32 %s1436_s0, 4  ;;  %s917_s12 = smov [#allocation6]   ;;  %s16_s11 = int_to_ptr.hbm [resolvable:$true] %s15_s11 }
   0x3   :  { %s17_s13 = sshll.u32 %s917_s12, 4  ;;  %s26_s16 = sshll.u32 %s1437_s1, 4  ;;  %s18_s13 = int_to_ptr.vmem [resolvable:$true] %s17_s13  ;;  %s27_s16 = int_to_ptr.hbm [resolvable:$true] %s26_s16 }
   0x4   :  { %20 = dma.hbm_to_vmem [thread:$0]  %s16_s11, 128, %s18_s13, [#allocation7]  }
   0x5   :  { %s918_s17 = smov [#allocation9]  }
   0x6   :  { %s28_s18 = sshll.u32 %s918_s17, 4  ;;  %s29_s18 = int_to_ptr.vmem [resolvable:$true] %s28_s18 }
   0x7   :  { %31 = dma.hbm_to_vmem [thread:$0]  %s27_s16, 128, %s29_s18, [#allocation10]  }
   0x8   :  { %911 = dma.done.wait [#allocation7], 128  }
   0x9   :  { %912 = vsyncadd [#allocation7], 4294967168 }
   0xa   :  { %913 = dma.done.wait [#allocation10], 128  }
   0xb   :  { %914 = vsyncadd [#allocation10], 4294967168  ;;  %v44_v0 = vlaneseq  ;;  %v981_v11 = vld [vmem:[#allocation6] sm:$0xff]  ;;  %v919_v12 = vmov 0.0   ;;  %v920_v17 = vmov 1.0   ;;  %s923_s1 = smov [#allocation11]  }
   0xc   :  { %138 = vmax.xlane.f32.xlu0 %v981_v11  ;;  %s737_s19 = sshll.u32 %s923_s1, 4  ;;  %s739_s22 = sshll.u32 %s1438_s2, 4  ;;  %s738_s19 = int_to_ptr.vmem [resolvable:$true] %s737_s19  ;;  %s740_s22 = int_to_ptr.hbm [resolvable:$true] %s739_s22 }
   0xd   :  { %v945_v1 = vshrl.u32 %v44_v0, 7  ;;  %v947_v2 = vand.u32 127, %v44_v0 }
   0xf   :  { %v950_v3 = vadd.s32 120, %v945_v1  ;;  %v953_v4 = vadd.s32 112, %v945_v1  ;;  %v956_v5 = vadd.s32 104, %v945_v1  ;;  %v959_v6 = vadd.s32 96, %v945_v1 }
  0x10   :  { %v962_v7 = vadd.s32 88, %v945_v1  ;;  %v965_v8 = vadd.s32 80, %v945_v1  ;;  %v968_v9 = vadd.s32 72, %v945_v1  ;;  %v971_v10 = vadd.s32 64, %v945_v1 }
  0x11   :  { %vm78_vm0 = vcmp.le.s32.totalorder %v950_v3, %v947_v2  ;;  %vm77_vm1 = vcmp.le.s32.totalorder %v953_v4, %v947_v2  ;;  %vm76_vm2 = vcmp.le.s32.totalorder %v956_v5, %v947_v2  ;;  %vm75_vm3 = vcmp.le.s32.totalorder %v959_v6, %v947_v2 }
  0x12   :  { %v765_v13 = vsel %vm78_vm0, 1.0, %v919_v12  ;;  %v764_v14 = vsel %vm77_vm1, 1.0, %v919_v12  ;;  %v763_v15 = vsel %vm76_vm2, 1.0, %v919_v12  ;;  %v762_v16 = vsel %vm75_vm3, 1.0, %v919_v12  ;;  %767 = vmatpush.msk.msra.mxu0 %vm78_vm0, %v920_v17  ;;  %783 = vmatpush.msk.msra.mxu3 %vm78_vm0, %v920_v17 }
  0x13   :  { %v1008_v18 = vsub.f32 %v765_v13, %v765_v13  ;;  %v1010_v19 = vsub.f32 %v764_v14, %v764_v14  ;;  %v1012_v20 = vsub.f32 %v763_v15, %v763_v15  ;;  %v1014_v21 = vsub.f32 %v762_v16, %v762_v16 }
  0x14   :  { %vm74_vm4 = vcmp.le.s32.totalorder %v962_v7, %v947_v2  ;;  %768 = vmatpush.msk.msra.mxu0 %vm77_vm1, %v920_v17  ;;  %vm73_vm5 = vcmp.le.s32.totalorder %v965_v8, %v947_v2  ;;  %vm72_vm6 = vcmp.le.s32.totalorder %v968_v9, %v947_v2  ;;  %vm71_vm7 = vcmp.le.s32.totalorder %v971_v10, %v947_v2 }
  0x15   :  { %v204_v22 = vand.u32 4294901760, %v1008_v18  ;;  %v210_v23 = vand.u32 4294901760, %v1010_v19  ;;  %v216_v24 = vand.u32 4294901760, %v1012_v20  ;;  %v222_v25 = vand.u32 4294901760, %v1014_v21  ;;  %305 = vmatpush.msra.mxu2 %v1008_v18  ;;  %784 = vmatpush.msk.msra.mxu3 %vm77_vm1, %v920_v17 }
  0x16   :  { %v761_v26 = vsel %vm74_vm4, 1.0, %v919_v12  ;;  %v760_v27 = vsel %vm73_vm5, 1.0, %v919_v12  ;;  %769 = vmatpush.msk.msra.mxu0 %vm76_vm2, %v920_v17  ;;  %v759_v28 = vsel %vm72_vm6, 1.0, %v919_v12  ;;  %v758_v29 = vsel %vm71_vm7, 1.0, %v919_v12 }
  0x17   :  { %v205_v30 = vsub.f32 %v1008_v18, %v204_v22  ;;  %v211_v31 = vsub.f32 %v1010_v19, %v210_v23  ;;  %v217_v32 = vsub.f32 %v1012_v20, %v216_v24  ;;  %v223_v33 = vsub.f32 %v1014_v21, %v222_v25  ;;  %308 = vmatpush.msra.mxu2 %v1010_v19 }
  0x18   :  { %v1070_v34 = vsub.f32 %v761_v26, %v761_v26  ;;  %v1072_v35 = vsub.f32 %v760_v27, %v760_v27  ;;  %v1074_v36 = vsub.f32 %v759_v28, %v759_v28  ;;  %770 = vmatpush.msk.msra.mxu0 %vm75_vm3, %v920_v17  ;;  %v1080_v37 = vsub.f32 %v758_v29, %v758_v29 }
  0x19   :  { %v206_v38 = vand.u32 4294901760, %v205_v30  ;;  %v212_v39 = vand.u32 4294901760, %v211_v31  ;;  %v218_v40 = vand.u32 4294901760, %v217_v32  ;;  %311 = vmatpush.msra.mxu2 %v1012_v20  ;;  %785 = vmatpush.msk.msra.mxu3 %vm76_vm2, %v920_v17  ;;  %v1096_v45 = vadd.s32 56, %v945_v1 }
  0x1a   :  { %v228_v41 = vand.u32 4294901760, %v1070_v34  ;;  %v234_v42 = vand.u32 4294901760, %v1072_v35  ;;  %v240_v43 = vand.u32 4294901760, %v1074_v36  ;;  %v246_v44 = vand.u32 4294901760, %v1080_v37  ;;  %771 = vmatpush.msk.msra.mxu0 %vm74_vm4, %v920_v17 }
  0x1b   :  { %207 = vmatpush.msra.mxu1 %v206_v38  ;;  %v1099_v46 = vadd.s32 48, %v945_v1  ;;  %v1102_v47 = vadd.s32 40, %v945_v1  ;;  %v1105_v48 = vadd.s32 32, %v945_v1  ;;  %314 = vmatpush.msra.mxu2 %v1014_v21  ;;  %v224_v49 = vand.u32 4294901760, %v223_v33 }
  0x1c   :  { %v229_v50 = vsub.f32 %v1070_v34, %v228_v41  ;;  %v235_v51 = vsub.f32 %v1072_v35, %v234_v42  ;;  %772 = vmatpush.msk.msra.mxu0 %vm73_vm5, %v920_v17  ;;  %vm70_vm8 = vcmp.le.s32.totalorder %v1096_v45, %v947_v2  ;;  %v241_v53 = vsub.f32 %v1074_v36, %v240_v43 }
  0x1d   :  { %213 = vmatpush.msra.mxu1 %v212_v39  ;;  %vm69_vm9 = vcmp.le.s32.totalorder %v1099_v46, %v947_v2  ;;  %vm68_vm10 = vcmp.le.s32.totalorder %v1102_v47, %v947_v2  ;;  %vm67_vm11 = vcmp.le.s32.totalorder %v1105_v48, %v947_v2  ;;  %v247_v54 = vsub.f32 %v1080_v37, %v246_v44 }
  0x1e   :  { %v230_v52 = vand.u32 4294901760, %v229_v50  ;;  %773 = vmatpush.msk.msra.mxu0 %vm72_vm6, %v920_v17  ;;  %317 = vmatpush.msra.mxu2 %v1070_v34  ;;  %v757_v55 = vsel %vm70_vm8, 1.0, %v919_v12  ;;  %v756_v56 = vsel %vm69_vm9, 1.0, %v919_v12  ;;  %v755_v57 = vsel %vm68_vm10, 1.0, %v919_v12 }
  0x1f   :  { %219 = vmatpush.msra.mxu1 %v218_v40  ;;  %v754_v58 = vsel %vm67_vm11, 1.0, %v919_v12  ;;  %786 = vmatpush.msk.msra.mxu3 %vm75_vm3, %v920_v17  ;;  %v1157_v59 = vsub.f32 %v757_v55, %v757_v55  ;;  %v1159_v60 = vsub.f32 %v756_v56, %v756_v56  ;;  %v1161_v61 = vsub.f32 %v755_v57, %v755_v57 }
  0x20   :  { %774 = vmatpush.msk.msra.mxu0 %vm71_vm7, %v920_v17  ;;  %v1167_v62 = vsub.f32 %v754_v58, %v754_v58  ;;  %v236_v63 = vand.u32 4294901760, %v235_v51  ;;  %v1170_v0 = vadd.s32 24, %v945_v1  ;;  %v1173_v13 = vadd.s32 16, %v945_v1  ;;  %320 = vmatpush.msra.mxu2 %v1072_v35 }
  0x21   :  { %225 = vmatpush.msra.mxu1 %v224_v49  ;;  %v1176_v14 = vadd.s32 8, %v945_v1  ;;  %v252_v15 = vand.u32 4294901760, %v1157_v59  ;;  %v258_v16 = vand.u32 4294901760, %v1159_v60  ;;  %v264_v26 = vand.u32 4294901760, %v1161_v61  ;;  %787 = vmatpush.msk.msra.mxu3 %vm74_vm4, %v920_v17 }
  0x22   :  { %775 = vmatpush.msk.msra.mxu0 %vm70_vm8, %v920_v17  ;;  %vm63_vm12 = vcmp.le.s32.totalorder %v945_v1, %v947_v2  ;;  %v242_v27 = vand.u32 4294901760, %v241_v53  ;;  %vm66_vm13 = vcmp.le.s32.totalorder %v1170_v0, %v947_v2  ;;  %vm65_vm14 = vcmp.le.s32.totalorder %v1173_v13, %v947_v2  ;;  %323 = vmatpush.msra.mxu2 %v1074_v36 }
  0x23   :  { %231 = vmatpush.msra.mxu1 %v230_v52  ;;  %vm64_vm15 = vcmp.le.s32.totalorder %v1176_v14, %v947_v2  ;;  %v248_v28 = vand.u32 4294901760, %v247_v54  ;;  %v253_v29 = vsub.f32 %v1157_v59, %v252_v15  ;;  %v270_v30 = vand.u32 4294901760, %v1167_v62  ;;  %788 = vmatpush.msk.msra.mxu3 %vm73_vm5, %v920_v17 }
  0x24   :  { %776 = vmatpush.msk.msra.mxu0 %vm69_vm9, %v920_v17  ;;  %v259_v31 = vsub.f32 %v1159_v60, %v258_v16  ;;  %v753_v32 = vsel %vm66_vm13, 1.0, %v919_v12  ;;  %v752_v33 = vsel %vm65_vm14, 1.0, %v919_v12  ;;  %v751_v38 = vsel %vm64_vm15, 1.0, %v919_v12  ;;  %326 = vmatpush.msra.mxu2 %v1080_v37 }
  0x25   :  { %237 = vmatpush.msra.mxu1 %v236_v63  ;;  %v265_v39 = vsub.f32 %v1161_v61, %v264_v26  ;;  %v750_v40 = vsel %vm63_vm12, 1.0, %v919_v12  ;;  %v254_v49 = vand.u32 4294901760, %v253_v29  ;;  %v1238_v50 = vsub.f32 %v753_v32, %v753_v32  ;;  %789 = vmatpush.msk.msra.mxu3 %vm72_vm6, %v920_v17 }
  0x26   :  { %777 = vmatpush.msk.msra.mxu0 %vm68_vm10, %v920_v17  ;;  %v1240_v51 = vsub.f32 %v752_v33, %v752_v33  ;;  %v1242_v52 = vsub.f32 %v751_v38, %v751_v38  ;;  %v271_v53 = vsub.f32 %v1167_v62, %v270_v30  ;;  %329 = vmatpush.msra.mxu2 %v1157_v59  ;;  %v260_v54 = vand.u32 4294901760, %v259_v31 }
  0x27   :  { %243 = vmatpush.msra.mxu1 %v242_v27  ;;  %v276_v55 = vand.u32 4294901760, %v1238_v50  ;;  %v1258_v57 = vsub.f32 %v750_v40, %v750_v40  ;;  %790 = vmatpush.msk.msra.mxu3 %vm71_vm7, %v920_v17  ;;  %v266_v58 = vand.u32 4294901760, %v265_v39  ;;  %v921_v3 = vmov -1e+30  }
  0x28   :  { %778 = vmatpush.msk.msra.mxu0 %vm67_vm11, %v920_v17  ;;  %v282_v56 = vand.u32 4294901760, %v1240_v51  ;;  %332 = vmatpush.msra.mxu2 %v1159_v60  ;;  %v288_v27 = vand.u32 4294901760, %v1242_v52 }
  0x29   :  { %249 = vmatpush.msra.mxu1 %v248_v28  ;;  %v277_v63 = vsub.f32 %v1238_v50, %v276_v55  ;;  %791 = vmatpush.msk.msra.mxu3 %vm70_vm8, %v920_v17  ;;  %v272_v28 = vand.u32 4294901760, %v271_v53  ;;  %v294_v31 = vand.u32 4294901760, %v1258_v57 }
  0x2a   :  { %779 = vmatpush.msk.msra.mxu0 %vm66_vm13, %v920_v17  ;;  %335 = vmatpush.msra.mxu2 %v1161_v61  ;;  %v283_v29 = vsub.f32 %v1240_v51, %v282_v56  ;;  %v289_v33 = vsub.f32 %v1242_v52, %v288_v27 }
  0x2b   :  { %255 = vmatpush.msra.mxu1 %v254_v49  ;;  %792 = vmatpush.msk.msra.mxu3 %vm69_vm9, %v920_v17  ;;  %v278_v32 = vand.u32 4294901760, %v277_v63  ;;  %v295_v39 = vsub.f32 %v1258_v57, %v294_v31 }
  0x2c   :  { %780 = vmatpush.msk.msra.mxu0 %vm65_vm14, %v920_v17  ;;  %338 = vmatpush.msra.mxu2 %v1167_v62  ;;  %v284_v38 = vand.u32 4294901760, %v283_v29  ;;  %v290_v40 = vand.u32 4294901760, %v289_v33 }
  0x2d   :  { %261 = vmatpush.msra.mxu1 %v260_v54  ;;  %793 = vmatpush.msk.msra.mxu3 %vm68_vm10, %v920_v17  ;;  %v296_v18 = vand.u32 4294901760, %v295_v39 }
  0x2e   :  { %781 = vmatpush.msk.msra.mxu0 %vm64_vm15, %v920_v17  ;;  %341 = vmatpush.msra.mxu2 %v1238_v50 }
  0x2f   :  { %267 = vmatpush.msra.mxu1 %v266_v58  ;;  %794 = vmatpush.msk.msra.mxu3 %vm67_vm11, %v920_v17 }
  0x30   :  { %782 = vmatpush.msk.msra.mxu0 %vm63_vm12, %v920_v17  ;;  %344 = vmatpush.msra.mxu2 %v1240_v51 }
  0x31   :  { %273 = vmatpush.msra.mxu1 %v272_v28  ;;  %795 = vmatpush.msk.msra.mxu3 %vm66_vm13, %v920_v17 }
  0x32   :  { %399 = vmatpush.msrb.mxu0 %v204_v22  ;;  %347 = vmatpush.msra.mxu2 %v1242_v52 }
  0x33   :  { %279 = vmatpush.msra.mxu1 %v278_v32  ;;  %796 = vmatpush.msk.msra.mxu3 %vm65_vm14, %v920_v17 }
  0x34   :  { %403 = vmatpush.msrb.mxu0 %v210_v23  ;;  %350 = vmatpush.msra.mxu2 %v1258_v57 }
  0x35   :  { %285 = vmatpush.msra.mxu1 %v284_v38  ;;  %797 = vmatpush.msk.msra.mxu3 %vm64_vm15, %v920_v17 }
  0x36   :  { %407 = vmatpush.msrb.mxu0 %v216_v24 }
  0x37   :  { %291 = vmatpush.msra.mxu1 %v290_v40  ;;  %798 = vmatpush.msk.msra.mxu3 %vm63_vm12, %v920_v17 }
  0x38   :  { %411 = vmatpush.msrb.mxu0 %v222_v25  ;;  %v922_v25 = vmov 0  }
  0x39   :  { %297 = vmatpush.msra.mxu1 %v296_v18  ;;  %829 = vset.pattern.permute.xlu2 %v922_v25 }
  0x3a   :  { %415 = vmatpush.msrb.mxu0 %v228_v41  ;;  %828 = vset.pattern.permute.xlu1 %v922_v25 }
  0x3b   :  { %799 = vmatpush.msk.msrb.mxu1 %vm78_vm0, %v920_v17  ;;  %vm132_vm0 = vcmask 0   ;;  %830 = vset.pattern.permute.xlu0 %v922_v25 }
  0x3c   :  { %419 = vmatpush.msrb.mxu0 %v234_v42  ;;  %133 = vst.msk [vmem:[#allocation4] sm:$0x1] %vm132_vm0, %v921_v3 }
  0x3d   :  { %800 = vmatpush.msk.msrb.mxu1 %vm77_vm1, %v920_v17  ;;  %134 = vst.msk [vmem:[#allocation5] sm:$0x1] %vm132_vm0, %v919_v12 }
  0x3e   :  { %423 = vmatpush.msrb.mxu0 %v240_v43  ;;  %135 = vst.msk [vmem:[#allocation11] sm:$0x1] %vm132_vm0, %v919_v12 }
  0x3f   :  { %801 = vmatpush.msk.msrb.mxu1 %vm76_vm2, %v920_v17  ;;  %vm127_vm2 = vcmp.lt.s32.totalorder %v947_v2, %v945_v1 }
  0x40   :  { %427 = vmatpush.msrb.mxu0 %v246_v44  ;;  %v766_v46 = vsel %vm127_vm2, 1.0, %v919_v12 }
  0x41   :  { %802 = vmatpush.msk.msrb.mxu1 %vm75_vm3, %v920_v17  ;;  %vm130_vm3 = vcmask 64512  }
  0x42   :  { %431 = vmatpush.msrb.mxu0 %v252_v15  ;;  %131 = vst.msk [vmem:[#allocation3] sm:$0xff] %vm130_vm3, %v766_v46 }
  0x43   :  { %803 = vmatpush.msk.msrb.mxu1 %vm74_vm4, %v920_v17  ;;  %v502_v34 = vld [vmem:[#allocation4] sm:$0x1]  ;;  %vm717_vm4 = vcmask 7168  }
  0x44   :  { %435 = vmatpush.msrb.mxu0 %v258_v16  ;;  %v512_v58 = vld [vmem:[#allocation5] sm:$0x1] }
  0x45   :  { %804 = vmatpush.msk.msrb.mxu1 %vm73_vm5, %v920_v17 }
  0x46   :  { %439 = vmatpush.msrb.mxu0 %v264_v26 }
  0x47   :  { %805 = vmatpush.msk.msrb.mxu1 %vm72_vm6, %v920_v17 }
  0x48   :  { %443 = vmatpush.msrb.mxu0 %v270_v30 }
  0x49   :  { %806 = vmatpush.msk.msrb.mxu1 %vm71_vm7, %v920_v17  ;;  %v526_v47 = vld [vmem:[#allocation3] sm:$0xff] }
  0x4a   :  { %447 = vmatpush.msrb.mxu0 %v276_v55  ;;  %v529_v48 = vsel %vm130_vm3, %v526_v47, 0 }
  0x4b   :  { %807 = vmatpush.msk.msrb.mxu1 %vm70_vm8, %v920_v17  ;;  %v548_v59 = vand.u32 4294901760, %v529_v48 }
  0x4c   :  { %451 = vmatpush.msrb.mxu0 %v282_v56 }
  0x4d   :  { %808 = vmatpush.msk.msrb.mxu1 %vm69_vm9, %v920_v17  ;;  %v549_v60 = vsub.f32 %v529_v48, %v548_v59 }
  0x4e   :  { %455 = vmatpush.msrb.mxu0 %v288_v27 }
  0x4f   :  { %809 = vmatpush.msk.msrb.mxu1 %vm68_vm10, %v920_v17  ;;  %v550_v61 = vand.u32 4294901760, %v549_v60 }
  0x50   :  { %459 = vmatpush.msrb.mxu0 %v294_v31 }
  0x51   :  { %810 = vmatpush.msk.msrb.mxu1 %vm67_vm11, %v920_v17  ;;  %v551_v62 = vsub.f32 %v549_v60, %v550_v61 }
  0x53   :  { %811 = vmatpush.msk.msrb.mxu1 %vm66_vm13, %v920_v17  ;;  %v552_v14 = vand.u32 4294901760, %v551_v62 }
  0x55   :  { %812 = vmatpush.msk.msrb.mxu1 %vm65_vm14, %v920_v17 }
  0x57   :  { %813 = vmatpush.msk.msrb.mxu1 %vm64_vm15, %v920_v17 }
  0x59   :  { %814 = vmatpush.msk.msrb.mxu1 %vm63_vm12, %v920_v17 }
  0x7f   :  { %v139_v4 = vpop.xlane.xlu0 %138 }
  0x80   :  { %v140_v5 = vsub.f32 %v981_v11, %v139_v4  ;;  %v503_v6 = vrot.slane %v139_v4, 4  ;;  %vm517_vm1 = vcmp.gt.f32.partialorder %v139_v4, -5e+29 }
  0x82   :  { %v141_v7 = vmul.f32 1.442695, %v140_v5  ;;  %v504_v8 = vmax.f32 %v139_v4, %v503_v6 }
  0x84   :  { %831 = vpow2.f32 %v141_v7  ;;  %v505_v9 = vrot.slane %v504_v8, 2 }
  0x86   :  { %v506_v10 = vmax.f32 %v504_v8, %v505_v9 }
  0x88   :  { %v507_v17 = vrot.slane %v506_v10, 1 }
  0x8a   :  { %v832_v19 = vpop.eup %831  ;;  %v508_v20 = vmax.f32 %v506_v10, %v507_v17 }
  0x8b   :  { %143 = vadd.xlane.f32.xlu0 %v832_v19  ;;  %v193_v21 = vand.u32 4294901760, %v832_v19 }
  0x8c   :  { %815 = vpush %v508_v20  ;;  %v137_v20 = vld [vmem:[#allocation9] sm:$0xff] }
  0x8d   :  { %299 = vmatmul.f32.vlgmr.msra.gmra.mxu1 %v193_v21  ;;  %v194_v22 = vsub.f32 %v832_v19, %v193_v21  ;;  %vm701_vm5 = vcmp.gt.f32.partialorder %v137_v20, 0.0 }
  0x8f   :  { %353 = vmatmul.f32.vlgmr.msra.gmra.mxu2 %v194_v22  ;;  %v195_v23 = vand.u32 4294901760, %v194_v22 }
  0x91   :  { %392 = vmatmul.f32.vlgmr.msra.gmra.mxu3 %v195_v23  ;;  %v196_v11 = vsub.f32 %v194_v22, %v195_v23 }
  0x93   :  { %v197_v24 = vand.u32 4294901760, %v196_v11 }
  0x95   :  { %198 = vmatmul.f32.vlgmr.msra.gmra.mxu0 %v197_v24  ;;  %498 = vmatmul.f32.vlgmr.msrb.gmra.mxu1 %v193_v21 }
  0x9d   :  { %461 = vmatmul.f32.vlgmr.msrb.gmra.mxu0 %v193_v21 }
  0xbd   :  { %s816_s0 = spop %815 }
  0xbe   :  { %v510_v35 = vstv %s816_s0 }
  0xbf   :  { %v511_v36 = vmax.f32 %v502_v34, %v510_v35 }
  0xc1   :  { %v513_v37 = vsub.f32 %v502_v34, %v511_v36  ;;  %731 = vst.msk [vmem:[#allocation4] sm:$0x1] %vm132_vm0, %v511_v36  ;;  %v519_v41 = vperm.slane %v511_v36, 0 }
  0xc3   :  { %696 = vperm.xlu2 %829, %v519_v41   ;;  %v521_v42 = vsub.f32 %v139_v4, %v519_v41  ;;  %v514_v51 = vmul.f32 1.442695, %v513_v37 }
  0xc5   :  { %v522_v43 = vmul.f32 1.442695, %v521_v42 }
  0xc7   :  { %833 = vpow2.f32 %v522_v43 }
  0xc8   :  { %835 = vpow2.f32 %v514_v51 }
  0xcd   :  { %v834_v44 = vpop.eup %833 }
  0xce   :  { %v524_v45 = vsel %vm517_vm1, %v834_v44, 0.0  ;;  %v836_v57 = vpop.eup %835 }
  0xcf   :  { %683 = vperm.xlu1 %828, %v524_v45   ;;  %v516_v28 = vmul.f32 %v836_v57, %v512_v58 }
  0xd1   :  { %v678_v33 = vperm.slane %v516_v28, 0 }
  0xfe   :  { %v144_v0 = vpop.xlane.xlu0 %143 }
  0xff   :  { %v525_v13 = vmul.f32 %v524_v45, %v144_v0 }
 0x101   :  { %v546_v15 = vand.u32 4294901760, %v525_v13  ;;  %v718_v16 = vsel %vm717_vm4, %v525_v13, 0.0 }
 0x102   :  { %719 = vadd.xlane.f32.xlu0 %v718_v16 }
 0x103   :  { %v573_v26 = vsub.f32 %v525_v13, %v546_v15  ;;  %547 = vmatpush.msrb.mxu2 %v546_v15 }
 0x104   :  { %553 = vmatmul.f32.vlgmr.msrb.gmra.mxu2 %v552_v14 }
 0x105   :  { %600 = vmatpush.msra.mxu2 %v573_v26  ;;  %v574_v1 = vand.u32 4294901760, %v573_v26 }
 0x107   :  { %649 = vmatpush.msrb.mxu2 %v574_v1  ;;  %v575_v2 = vsub.f32 %v573_v26, %v574_v1 }
 0x109   :  { %v576_v12 = vand.u32 4294901760, %v575_v2 }
 0x10a   :  { %v300_v40 = vpop.f32.mrf.mxu1 }
 0x10b   :  { %577 = vmatpush.msrb.mxu3 %v576_v12 }
 0x10c   :  { %579 = vmatmul.f32.vlgmr.msrb.gmra.mxu3 %v548_v59  ;;  %603 = vmatmul.f32.vlgmr.msra.gmra.mxu2 %v549_v60 }
 0x10d   :  { %623 = vmatpush.msra.mxu3 %v546_v15 }
 0x10f   :  { %671 = vmatpush.msrb.mxu3 %v546_v15 }
 0x112   :  { %v354_v30 = vpop.f32.mrf.mxu2  ;;  %v199_v39 = vpop.f32.mrf.mxu0 }
 0x113   :  { %v301_v18 = vadd.f32 %v300_v40, %v199_v39  ;;  %v499_v8 = vpop.f32.mrf.mxu1 }
 0x114   :  { %627 = vmatmul.f32.vlgmr.msra.gmra.mxu3 %v550_v61  ;;  %651 = vmatmul.f32.vlgmr.msrb.gmra.mxu2 %v548_v59  ;;  %v393_v49 = vpop.f32.mrf.mxu3  ;;  %v700_v61 = vld [vmem:[#allocation11] sm:$0x1] }
 0x115   :  { %v355_v3 = vadd.f32 %v354_v30, %v301_v18 }
 0x117   :  { %v394_v5 = vadd.f32 %v393_v49, %v355_v3 }
 0x11a   :  { %v462_v4 = vpop.f32.mrf.mxu0 }
 0x11b   :  { %v463_v7 = vadd.f32 %v462_v4, %v394_v5 }
 0x11c   :  { %673 = vmatmul.f32.vlgmr.msrb.gmra.mxu3 %v548_v59 }
 0x11d   :  { %v500_v9 = vadd.f32 %v499_v8, %v463_v7  ;;  %v697_v23 = vpop.permute.xlu2 %696 }
 0x141   :  { %v684_v6 = vpop.permute.xlu1 %683 }
 0x142   :  { %v686_v10 = vmul.f32 %v684_v6, %v500_v9 }
 0x175   :  { %v720_v34 = vpop.xlane.xlu0 %719 }
 0x176   :  { %v721_v35 = vrot.slane %v720_v34, 4 }
 0x178   :  { %v722_v36 = vadd.f32 %v721_v35, %v720_v34 }
 0x17a   :  { %v723_v37 = vrot.slane %v722_v36, 2 }
 0x17c   :  { %v724_v44 = vadd.f32 %v723_v37, %v722_v36 }
 0x17e   :  { %v725_v47 = vrot.slane %v724_v44, 1 }
 0x180   :  { %v726_v60 = vadd.f32 %v725_v47, %v724_v44 }
 0x187   :  { %v554_v50 = vpop.f32.mrf.mxu2 }
 0x18f   :  { %v580_v52 = vpop.f32.mrf.mxu3  ;;  %v604_v53 = vpop.f32.mrf.mxu2 }
 0x190   :  { %v581_v54 = vadd.f32 %v580_v52, %v554_v50 }
 0x192   :  { %v605_v56 = vadd.f32 %v604_v53, %v581_v54 }
 0x197   :  { %v628_v55 = vpop.f32.mrf.mxu3  ;;  %v652_v27 = vpop.f32.mrf.mxu2 }
 0x198   :  { %v629_v63 = vadd.f32 %v628_v55, %v605_v56 }
 0x19a   :  { %v653_v29 = vadd.f32 %v652_v27, %v629_v63 }
 0x19f   :  { %v674_v31 = vpop.f32.mrf.mxu3 }
 0x1a0   :  { %v675_v32 = vadd.f32 %v674_v31, %v653_v29 }
 0x1a2   :  { %v680_v38 = vadd.f32 %v678_v33, %v675_v32 }
 0x1a4   :  { %689 = vperm.xlu1 %828, %v680_v38  }
 0x216   :  { %v690_v17 = vpop.permute.xlu1 %689 }
 0x217   :  { %v692_v19 = vadd.f32 %v690_v17, %v686_v10 }
 0x219   :  { %837 = vlog2.f32 %v692_v19 }
 0x21f   :  { %v838_v21 = vpop.eup %837 }
 0x220   :  { %v694_v22 = vmul.f32 0.6931472, %v838_v21 }
 0x222   :  { %v699_v11 = vadd.f32 %v697_v23, %v694_v22 }
 0x224   :  { %v702_v24 = vsel %vm701_vm5, %v699_v11, 0.0 }
 0x225   :  { %v703_v25 = vmul.f32 %v702_v24, %v137_v20 }
 0x227   :  { %704 = vadd.xlane.f32.xlu2 %v703_v25 }
 0x29a   :  { %v705_v41 = vpop.xlane.xlu2 %704 }
 0x29b   :  { %v706_v42 = vrot.slane %v705_v41, 4 }
 0x29d   :  { %v707_v43 = vadd.f32 %v706_v42, %v705_v41 }
 0x29f   :  { %v708_v45 = vrot.slane %v707_v43, 2 }
 0x2a1   :  { %v709_v46 = vadd.f32 %v708_v45, %v707_v43 }
 0x2a3   :  { %v710_v48 = vrot.slane %v709_v46, 1 }
 0x2a5   :  { %v711_v59 = vadd.f32 %v710_v48, %v709_v46 }
 0x2a7   :  { %817 = vpush %v711_v59 }
 0x2a8   :  { %819 = vpush %v726_v60 }
 0x2d8   :  { %s818_s23 = spop %817 }
 0x2d9   :  { %v713_v62 = vstv %s818_s23  ;;  %s820_s24 = spop %819 }
 0x2da   :  { %v714_v0 = vadd.f32 %v713_v62, %v700_v61  ;;  %v728_v13 = vstv %s820_s24 }
 0x2db   :  { %v729_v14 = vadd.f32 %v728_v13, %v516_v28 }
 0x2dc   :  { %716 = vst.msk [vmem:[#allocation11] sm:$0x1] %vm132_vm0, %v714_v0 }
 0x2dd   :  { %730 = vst.msk [vmem:[#allocation5] sm:$0x1] %vm132_vm0, %v729_v14  ;;  %742 = dma.vmem_to_hbm [thread:$0]  %s738_s19, 16, %s740_s22, [#allocation8]  }
 0x2de   :  { %915 = dma.done.wait [#allocation8], 16  }
 0x2df   :  { %916 = vsyncadd [#allocation8], 4294967280 }
 0x2e0   :  { %747 = vsyncpa [#allocation7], 1 }
 0x2e1   :  { %748 = vsyncpa [#allocation10], 1 }
 0x2e2   :  { %749 = vsyncpa [#allocation8], 1 }

</bundles_post_ra>
